<compile_context>
chip_gen: v5e
topology: v5e:2x2
jax: 0.10.0
libtpu: 0.0.40
codegen_flags: <defaults>
</compile_context>

<pallas_src>
import functools

import jax
import jax.numpy as jnp
from jax.experimental import pallas as pl
from jax.experimental.pallas import tpu as pltpu


# ----------------------------------------------------------------------------
# Kernel: one GRU-critic step, batch-on-lanes, hidden state carried in the
# resident h output block across the (last, "arbitrary") time grid axis.
#
#   xT_ref   (Din, Bb)  critic input for step t (streamed per grid step)
#   h0T_ref  (H,  Bb)   initial hidden state (read only at t == 0)
#   w1T_ref  (H, Din)   fc1 weight (out x in layout)
#   wga_ref  (3H, H)    GRU input-side weights, rows [Wir; Wiz; Win]
#   wgh_ref  (3H, H)    GRU hidden-side weights, rows [Whr; Whz; Whn]
#   misc_ref (6H, 1)    [b1; bir+bhr; biz+bhz; bin; bhn; w2] as columns
#   b2_ref   SMEM (1,1) fc2 bias scalar
#   valT_ref (1, Bb)    value output for step t (lane-dense store)
#   hT_ref   (H, Bb)    hidden-state carry / final hidden output
# ----------------------------------------------------------------------------
def _critic_rnn_kernel(xT_ref, h0T_ref, w1T_ref, wga_ref, wgh_ref, misc_ref,
                       b2_ref, valT_ref, hT_ref, *, use_relu: bool,
                       hidden: int):
    H = hidden
    t = pl.program_id(1)

    # Initialize the resident hidden-state block at the start of each rollout.
    @pl.when(t == 0)
    def _():
        hT_ref[...] = h0T_ref[...]

    xT = xT_ref[...]                         # (Din, Bb)
    hT = hT_ref[...]                         # (H, Bb)
    misc = misc_ref[...]                     # (6H, 1)
    b1 = misc[0 * H:1 * H, :]                # (H, 1)
    bg_a = misc[1 * H:4 * H, :]              # (3H, 1): [bir+bhr; biz+bhz; bin]
    bhn = misc[4 * H:5 * H, :]               # (H, 1)
    w2 = misc[5 * H:6 * H, :]                # (H, 1)

    # fc1 + activation (batch on lanes -> lane-dense VPU/EUP work).
    aT = jnp.dot(w1T_ref[...], xT, preferred_element_type=jnp.float32) + b1
    aT = jnp.maximum(aT, 0.0) if use_relu else jnp.tanh(aT)

    # GRU gate pre-activations: two dense MXU matmuls, no concat, no zero blocks.
    gi = jnp.dot(wga_ref[...], aT, preferred_element_type=jnp.float32) + bg_a
    gh = jnp.dot(wgh_ref[...], hT, preferred_element_type=jnp.float32)

    # Gate extraction = aligned sublane slices (H is a multiple of 8).
    r = jax.nn.sigmoid(gi[0 * H:1 * H, :] + gh[0 * H:1 * H, :])
    z = jax.nn.sigmoid(gi[1 * H:2 * H, :] + gh[1 * H:2 * H, :])
    n = jnp.tanh(gi[2 * H:3 * H, :] + r * (gh[2 * H:3 * H, :] + bhn))
    h_new = (1.0 - z) * n + z * hT           # (H, Bb)

    hT_ref[...] = h_new
    # fc2 as multiply + sublane reduction -> lane-dense (1, Bb) value store.
    valT_ref[...] = jnp.sum(h_new * w2, axis=0, keepdims=True) + b2_ref[0, 0]


# ----------------------------------------------------------------------------
# Batch-tile heuristic (lane axis): multiples of 128 for unmasked stores,
# >= 2 parallel tiles once the batch is big enough (v7x megacore), and a cap
# far below any VMEM concern (per-tile working set is < 1 MiB even at 2048).
# ----------------------------------------------------------------------------
def _choose_block_b(batch: int) -> int:
    if batch <= 128:
        return batch
    n_chunks = int(pl.cdiv(batch, 128))          # 128-lane chunks
    per_tile = int(pl.cdiv(n_chunks, 2))         # aim for >= 2 parallel tiles
    return min(2048, per_tile * 128)


# ----------------------------------------------------------------------------
# Fused T-step rollout: one pallas_call, grid = (batch_tiles, T).
# ----------------------------------------------------------------------------
def critic_rnn_rollout(x_seq, h0, packed, *, use_relu: bool = True,
                       block_b=None):
    """x_seq: (T, B, critic_input_dim) f32; h0: (B, H) f32 or None (zeros).

    Returns (values (T, B, 1), h_final (B, H)).
    """
    T, B, Din = x_seq.shape
    H = packed["hidden"]
    assert packed["w1T"].shape == (H, Din)
    if h0 is None:
        h0 = jnp.zeros((B, H), jnp.float32)

    bb = int(block_b) if block_b is not None else _choose_block_b(B)
    B_pad = int(pl.cdiv(B, bb)) * bb
    assert bb % 128 == 0 or bb == B_pad, (
        "block_b must be a multiple of 128 or cover the whole (padded) batch")

    # Batch-on-lanes layout: batch is the 128-lane axis inside the kernel.
    # (Store rollout buffers batch-minor in production to skip these transposes.)
    xT = jnp.transpose(x_seq.astype(jnp.float32), (0, 2, 1))   # (T, Din, B)
    hT = jnp.transpose(h0.astype(jnp.float32))                 # (H, B)
    if B_pad != B:
        xT = jnp.pad(xT, ((0, 0), (0, 0), (0, B_pad - B)))
        hT = jnp.pad(hT, ((0, 0), (0, B_pad - B)))
    nb = B_pad // bb

    w1T = packed["w1T"]          # (H, Din)
    wga = packed["wg_aT"]        # (3H, H)
    wgh = packed["wg_hT"]        # (3H, H)
    misc = packed["misc"]        # (6H, 1)
    b2 = packed["b2"]            # (1, 1)

    kernel = functools.partial(_critic_rnn_kernel, use_relu=use_relu, hidden=H)

    in_specs = [
        # x_t: streamed one time-step per grid step.
        pl.BlockSpec((None, Din, bb), lambda b, t: (t, 0, b)),
        # h0: constant index across t -> DMA'd once per batch tile.
        pl.BlockSpec((H, bb), lambda b, t: (0, b)),
        # Weights / biases: constant index across the whole grid -> loaded once.
        pl.BlockSpec(w1T.shape, lambda b, t: (0, 0)),
        pl.BlockSpec(wga.shape, lambda b, t: (0, 0)),
        pl.BlockSpec(wgh.shape, lambda b, t: (0, 0)),
        pl.BlockSpec(misc.shape, lambda b, t: (0, 0)),
        pl.BlockSpec((1, 1), lambda b, t: (0, 0),
                     memory_space=pltpu.MemorySpace.SMEM),
    ]
    out_specs = [
        # value_t: lane-dense (1, bb) block per time step.
        pl.BlockSpec((None, 1, bb), lambda b, t: (t, 0, b)),
        # hidden-state carry: same block across t -> resident accumulator.
        pl.BlockSpec((H, bb), lambda b, t: (0, b)),
    ]

    valT, hT_out = pl.pallas_call(
        kernel,
        out_shape=(
            jax.ShapeDtypeStruct((T, 1, B_pad), jnp.float32),
            jax.ShapeDtypeStruct((H, B_pad), jnp.float32),
        ),
        grid=(nb, T),
        in_specs=in_specs,
        out_specs=out_specs,
        compiler_params=pltpu.CompilerParams(
            # Batch tiles shard across TensorCores (v7x); time is the
            # sequential carry axis and must stay "arbitrary".
            dimension_semantics=("parallel", "arbitrary")),
    )(xT, hT, w1T, wga, wgh, misc, b2)

    values = jnp.transpose(valT, (0, 2, 1))[:, :B, :]            # (T, B, 1)
    h_final = jnp.transpose(hT_out)[:B, :]                       # (B, H)
    return values, h_final


# ----------------------------------------------------------------------------
# Single-step forward (the PyTorch module's forward) = T=1 rollout.
# ----------------------------------------------------------------------------
def critic_rnn_forward(x, h, packed, *, use_relu: bool = True, block_b=None):
    """x: (B, critic_input_dim) f32, h: (B, H) f32 or None.

    Returns (value (B, 1), h_new (B, H)).
    """
    values, h_new = critic_rnn_rollout(x[None], h, packed,
                                       use_relu=use_relu, block_b=block_b)
    return values[0], h_new


# ----------------------------------------------------------------------------
# Deterministic parameter init (orthogonal weights, zero biases) — mirrors
# orthogonal_init(layer, gain=1.0).  Stored in "x @ W" layout for the
# pure-JAX reference; pack_params builds the kernel's transposed layout.
# ----------------------------------------------------------------------------
def _orthogonal(key, shape, gain=1.0):
    rows, cols = shape
    n = max(rows, cols)
    a = jax.random.normal(key, (n, n), dtype=jnp.float32)
    q, r = jnp.linalg.qr(a)
    q = q * jnp.sign(jnp.diag(r))
    return (gain * q[:rows, :cols]).astype(jnp.float32)


def make_params(key, critic_input_dim, hidden_dim):
    H = hidden_dim
    k1, k2, k3, k4 = jax.random.split(key, 4)
    w_fc1 = _orthogonal(k1, (H, critic_input_dim))   # (H, Din)
    w_ih = _orthogonal(k2, (3 * H, H))               # gate order r, z, n
    w_hh = _orthogonal(k3, (3 * H, H))
    w_fc2 = _orthogonal(k4, (1, H))
    zeros_h = jnp.zeros((1, H), jnp.float32)
    return {
        "w1": jnp.transpose(w_fc1),                  # (Din, H)
        "b1": zeros_h,
        "wir": jnp.transpose(w_ih[0 * H:1 * H]),     # (H, H)
        "wiz": jnp.transpose(w_ih[1 * H:2 * H]),
        "win": jnp.transpose(w_ih[2 * H:3 * H]),
        "bir": zeros_h, "biz": zeros_h, "bin": zeros_h,
        "whr": jnp.transpose(w_hh[0 * H:1 * H]),
        "whz": jnp.transpose(w_hh[1 * H:2 * H]),
        "whn": jnp.transpose(w_hh[2 * H:3 * H]),
        "bhr": zeros_h, "bhz": zeros_h, "bhn": zeros_h,
        "w2": jnp.transpose(w_fc2),                  # (H, 1)
        "b2": jnp.zeros((1, 1), jnp.float32),
    }


def pack_params(p, hidden_dim):
    """Repack into the fused batch-on-lanes kernel layout (zero-cost at init)."""
    H = hidden_dim
    wg_aT = jnp.concatenate([jnp.transpose(p["wir"]),
                             jnp.transpose(p["wiz"]),
                             jnp.transpose(p["win"])], axis=0)   # (3H, H)
    wg_hT = jnp.concatenate([jnp.transpose(p["whr"]),
                             jnp.transpose(p["whz"]),
                             jnp.transpose(p["whn"])], axis=0)   # (3H, H)
    misc = jnp.concatenate([jnp.transpose(p["b1"]),              # (H, 1)
                            jnp.transpose(p["bir"] + p["bhr"]),
                            jnp.transpose(p["biz"] + p["bhz"]),
                            jnp.transpose(p["bin"]),
                            jnp.transpose(p["bhn"]),
                            p["w2"]], axis=0)                    # (6H, 1)
    return {
        "hidden": H,
        "w1T": jnp.transpose(p["w1"]),               # (H, Din)
        "wg_aT": wg_aT,
        "wg_hT": wg_hT,
        "misc": misc,
        "b2": p["b2"].reshape(1, 1),
    }


# ----------------------------------------------------------------------------
# Pure-JAX references (PyTorch GRUCell math) for correctness checks
# ----------------------------------------------------------------------------
def reference_forward(x, h, p, *, use_relu=True):
    a = x @ p["w1"] + p["b1"]
    a = jnp.maximum(a, 0.0) if use_relu else jnp.tanh(a)
    r = jax.nn.sigmoid(a @ p["wir"] + p["bir"] + h @ p["whr"] + p["bhr"])
    z = jax.nn.sigmoid(a @ p["wiz"] + p["biz"] + h @ p["whz"] + p["bhz"])
    n = jnp.tanh(a @ p["win"] + p["bin"] + r * (h @ p["whn"] + p["bhn"]))
    h_new = (1.0 - z) * n + z * h
    value = h_new @ p["w2"] + p["b2"]
    return value, h_new


def reference_rollout(x_seq, h0, p, *, use_relu=True):
    def step(h, x):
        v, h_new = reference_forward(x, h, p, use_relu=use_relu)
        return h_new, v
    h_final, values = jax.lax.scan(step, h0, x_seq)
    return values, h_final


if __name__ == "__main__":
    CRITIC_INPUT_DIM = 24     # critic_input_dim
    HIDDEN = 32               # args.rnn_hidden_dim
    USE_RELU = True           # args.use_relu = 1

    key = jax.random.PRNGKey(0)
    k_x, k_p, k_x2 = jax.random.split(key, 3)
    params = make_params(k_p, CRITIC_INPUT_DIM, HIDDEN)
    packed = pack_params(params, HIDDEN)

    # --- single-step forward (the module's forward), tiny batch -------------
    B = 8
    x = jax.random.normal(k_x, (B, CRITIC_INPUT_DIM), dtype=jnp.float32)
    h0 = jnp.zeros((B, HIDDEN), jnp.float32)          # rnn_hidden = None
    value, h_new = critic_rnn_forward(x, h0, packed, use_relu=USE_RELU)
    value, h_new = jax.block_until_ready((value, h_new))
    v_ref, h_ref = reference_forward(x, h0, params, use_relu=USE_RELU)
    assert value.shape == (B, 1) and h_new.shape == (B, HIDDEN)
    assert jnp.allclose(value, v_ref, atol=1e-4, rtol=1e-4)
    assert jnp.allclose(h_new, h_ref, atol=1e-4, rtol=1e-4)

    # --- fused T-step rollout: exercises batch padding + 2 parallel tiles ---
    T, B2 = 6, 200
    x_seq = jax.random.normal(k_x2, (T, B2, CRITIC_INPUT_DIM), dtype=jnp.float32)
    vals, h_fin = critic_rnn_rollout(x_seq, None, packed, use_relu=USE_RELU)
    vals, h_fin = jax.block_until_ready((vals, h_fin))
    v_ref2, h_ref2 = reference_rollout(
        x_seq, jnp.zeros((B2, HIDDEN), jnp.float32), params, use_relu=USE_RELU)
    assert vals.shape == (T, B2, 1) and h_fin.shape == (B2, HIDDEN)
    assert jnp.allclose(vals, v_ref2, atol=1e-4, rtol=1e-4)
    assert jnp.allclose(h_fin, h_ref2, atol=1e-4, rtol=1e-4)

    # --- tanh activation path (args.use_relu = 0) ----------------------------
    v_t, h_t = critic_rnn_forward(x, h0, packed, use_relu=False)
    v_t, h_t = jax.block_until_ready((v_t, h_t))
    v_tr, h_tr = reference_forward(x, h0, params, use_relu=False)
    assert jnp.allclose(v_t, v_tr, atol=1e-4, rtol=1e-4)
    assert jnp.allclose(h_t, h_tr, atol=1e-4, rtol=1e-4)

    print("KERNEL_OK")
</pallas_src>

<mosaic_0001>
module attributes {stable_mosaic.version = 11 : i64} {
  func.func @_critic_rnn_kernel(%arg0: i32, %arg1: i32, %arg2: memref<1x24x8xf32, #tpu.memory_space<vmem>>, %arg3: memref<32x8xf32, #tpu.memory_space<vmem>>, %arg4: memref<32x24xf32, #tpu.memory_space<vmem>>, %arg5: memref<96x32xf32, #tpu.memory_space<vmem>>, %arg6: memref<96x32xf32, #tpu.memory_space<vmem>>, %arg7: memref<192x1xf32, #tpu.memory_space<vmem>>, %arg8: memref<1x1xf32, #tpu.memory_space<smem>>, %arg9: memref<1x1x8xf32, #tpu.memory_space<vmem>>, %arg10: memref<32x8xf32, #tpu.memory_space<vmem>>) attributes {dimension_semantics = [#tpu.dimension_semantics<parallel>, #tpu.dimension_semantics<arbitrary>], iteration_bounds = array<i64: 1, 1>, scalar_prefetch = 0 : i64, scratch_operands = 0 : i64, tpu.core_type = #tpu.core_type<tc>, window_params = [{transform_indices = @transform_0, window_bounds = array<i64: 1, 24, 8>}, {transform_indices = @transform_1, window_bounds = array<i64: 32, 8>}, {pipeline_mode = #tpu.pipeline_mode<synchronous>, transform_indices = @transform_2, window_bounds = array<i64: 32, 24>}, {pipeline_mode = #tpu.pipeline_mode<synchronous>, transform_indices = @transform_3, window_bounds = array<i64: 96, 32>}, {pipeline_mode = #tpu.pipeline_mode<synchronous>, transform_indices = @transform_4, window_bounds = array<i64: 96, 32>}, {pipeline_mode = #tpu.pipeline_mode<synchronous>, transform_indices = @transform_5, window_bounds = array<i64: 192, 1>}, {transform_indices = @transform_6, window_bounds = array<i64: 1, 1>}, {transform_indices = @transform_7, window_bounds = array<i64: 1, 1, 8>}, {transform_indices = @transform_8, window_bounds = array<i64: 32, 8>}]} {
    %c0_i32 = arith.constant 0 : i32
    %0 = arith.cmpi eq, %arg1, %c0_i32 : i32
    %1 = arith.extui %0 : i1 to i32
    %c0_i32_0 = arith.constant 0 : i32
    %2 = arith.cmpi ne, %1, %c0_i32_0 : i32
    scf.if %2 {
      %c0_27 = arith.constant 0 : index
      %c0_28 = arith.constant 0 : index
      %62 = vector.load %arg3[%c0_27, %c0_28] : memref<32x8xf32, #tpu.memory_space<vmem>>, vector<32x8xf32>
      %c0_29 = arith.constant 0 : index
      %c0_30 = arith.constant 0 : index
      %63 = vector.load %arg10[%c0_29, %c0_30] : memref<32x8xf32, #tpu.memory_space<vmem>>, vector<32x8xf32>
      tpu.vector_store %arg10[%c0_29, %c0_30], %62 {strides = array<i32>} : memref<32x8xf32, #tpu.memory_space<vmem>>, vector<32x8xf32>,
    } else {
    }
    %c0 = arith.constant 0 : index
    %c0_1 = arith.constant 0 : index
    %c0_2 = arith.constant 0 : index
    %3 = vector.load %arg2[%c0, %c0_1, %c0_2] : memref<1x24x8xf32, #tpu.memory_space<vmem>>, vector<1x24x8xf32>
    %4 = vector.shape_cast %3 : vector<1x24x8xf32> to vector<24x8xf32>
    %c0_3 = arith.constant 0 : index
    %c0_4 = arith.constant 0 : index
    %5 = vector.load %arg10[%c0_3, %c0_4] : memref<32x8xf32, #tpu.memory_space<vmem>>, vector<32x8xf32>
    %c0_5 = arith.constant 0 : index
    %c0_6 = arith.constant 0 : index
    %6 = vector.load %arg7[%c0_5, %c0_6] : memref<192x1xf32, #tpu.memory_space<vmem>>, vector<192x1xf32>
    %7 = vector.extract_strided_slice %6 {offsets = [0, 0], sizes = [32, 1], strides = [1, 1]} : vector<192x1xf32> to vector<32x1xf32>
    %8 = vector.extract_strided_slice %6 {offsets = [32, 0], sizes = [96, 1], strides = [1, 1]} : vector<192x1xf32> to vector<96x1xf32>
    %9 = vector.extract_strided_slice %6 {offsets = [128, 0], sizes = [32, 1], strides = [1, 1]} : vector<192x1xf32> to vector<32x1xf32>
    %10 = vector.extract_strided_slice %6 {offsets = [160, 0], sizes = [32, 1], strides = [1, 1]} : vector<192x1xf32> to vector<32x1xf32>
    %c0_7 = arith.constant 0 : index
    %c0_8 = arith.constant 0 : index
    %11 = vector.load %arg4[%c0_7, %c0_8] : memref<32x24xf32, #tpu.memory_space<vmem>>, vector<32x24xf32>
    %cst = arith.constant dense<0.000000e+00> : vector<32x8xf32>
    %12 = tpu.matmul %11, %4, %cst {dimension_numbers = #tpu.dot_dimension_numbers<[1], [0], [0], [1], [0, 0, 1, 1], [], []>} : vector<32x24xf32>, vector<24x8xf32>, vector<32x8xf32> -> vector<32x8xf32>
    %13 = vector.broadcast %7 : vector<32x1xf32> to vector<32x8xf32>
    %14 = arith.addf %12, %13 : vector<32x8xf32>
    %cst_9 = arith.constant 0.000000e+00 : f32
    %15 = vector.broadcast %cst_9 : f32 to vector<32x8xf32>
    %16 = arith.maximumf %14, %15 : vector<32x8xf32>
    %c0_10 = arith.constant 0 : index
    %c0_11 = arith.constant 0 : index
    %17 = vector.load %arg5[%c0_10, %c0_11] : memref<96x32xf32, #tpu.memory_space<vmem>>, vector<96x32xf32>
    %cst_12 = arith.constant dense<0.000000e+00> : vector<96x8xf32>
    %18 = tpu.matmul %17, %16, %cst_12 {dimension_numbers = #tpu.dot_dimension_numbers<[1], [0], [0], [1], [0, 0, 1, 1], [], []>} : vector<96x32xf32>, vector<32x8xf32>, vector<96x8xf32> -> vector<96x8xf32>
    %19 = vector.broadcast %8 : vector<96x1xf32> to vector<96x8xf32>
    %20 = arith.addf %18, %19 : vector<96x8xf32>
    %c0_13 = arith.constant 0 : index
    %c0_14 = arith.constant 0 : index
    %21 = vector.load %arg6[%c0_13, %c0_14] : memref<96x32xf32, #tpu.memory_space<vmem>>, vector<96x32xf32>
    %cst_15 = arith.constant dense<0.000000e+00> : vector<96x8xf32>
    %22 = tpu.matmul %21, %5, %cst_15 {dimension_numbers = #tpu.dot_dimension_numbers<[1], [0], [0], [1], [0, 0, 1, 1], [], []>} : vector<96x32xf32>, vector<32x8xf32>, vector<96x8xf32> -> vector<96x8xf32>
    %23 = vector.extract_strided_slice %20 {offsets = [0, 0], sizes = [32, 8], strides = [1, 1]} : vector<96x8xf32> to vector<32x8xf32>
    %24 = vector.extract_strided_slice %22 {offsets = [0, 0], sizes = [32, 8], strides = [1, 1]} : vector<96x8xf32> to vector<32x8xf32>
    %25 = arith.addf %23, %24 : vector<32x8xf32>
    %26 = arith.negf %25 : vector<32x8xf32>
    %27 = math.exp %26 : vector<32x8xf32>
    %cst_16 = arith.constant 1.000000e+00 : f32
    %28 = vector.broadcast %cst_16 : f32 to vector<32x8xf32>
    %29 = arith.addf %28, %27 : vector<32x8xf32>
    %30 = arith.divf %28, %29 : vector<32x8xf32>
    %31 = vector.extract_strided_slice %20 {offsets = [32, 0], sizes = [32, 8], strides = [1, 1]} : vector<96x8xf32> to vector<32x8xf32>
    %32 = vector.extract_strided_slice %22 {offsets = [32, 0], sizes = [32, 8], strides = [1, 1]} : vector<96x8xf32> to vector<32x8xf32>
    %33 = arith.addf %31, %32 : vector<32x8xf32>
    %34 = arith.negf %33 : vector<32x8xf32>
    %35 = math.exp %34 : vector<32x8xf32>
    %cst_17 = arith.constant 1.000000e+00 : f32
    %36 = vector.broadcast %cst_17 : f32 to vector<32x8xf32>
    %37 = arith.addf %36, %35 : vector<32x8xf32>
    %38 = arith.divf %36, %37 : vector<32x8xf32>
    %39 = vector.extract_strided_slice %20 {offsets = [64, 0], sizes = [32, 8], strides = [1, 1]} : vector<96x8xf32> to vector<32x8xf32>
    %40 = vector.extract_strided_slice %22 {offsets = [64, 0], sizes = [32, 8], strides = [1, 1]} : vector<96x8xf32> to vector<32x8xf32>
    %41 = vector.broadcast %9 : vector<32x1xf32> to vector<32x8xf32>
    %42 = arith.addf %40, %41 : vector<32x8xf32>
    %43 = arith.mulf %30, %42 : vector<32x8xf32>
    %44 = arith.addf %39, %43 : vector<32x8xf32>
    %45 = math.tanh %44 : vector<32x8xf32>
    %cst_18 = arith.constant 1.000000e+00 : f32
    %46 = vector.broadcast %cst_18 : f32 to vector<32x8xf32>
    %47 = arith.subf %46, %38 : vector<32x8xf32>
    %48 = arith.mulf %47, %45 : vector<32x8xf32>
    %49 = arith.mulf %38, %5 : vector<32x8xf32>
    %50 = arith.addf %48, %49 : vector<32x8xf32>
    %c0_19 = arith.constant 0 : index
    %c0_20 = arith.constant 0 : index
    %51 = vector.load %arg10[%c0_19, %c0_20] : memref<32x8xf32, #tpu.memory_space<vmem>>, vector<32x8xf32>
    tpu.vector_store %arg10[%c0_19, %c0_20], %50 {strides = array<i32>} : memref<32x8xf32, #tpu.memory_space<vmem>>, vector<32x8xf32>,
    %52 = vector.broadcast %10 : vector<32x1xf32> to vector<32x8xf32>
    %53 = arith.mulf %50, %52 : vector<32x8xf32>
    %cst_21 = arith.constant dense<0.000000e+00> : vector<8xf32>
    %54 = vector.multi_reduction <add>, %53, %cst_21 [0] : vector<32x8xf32> to vector<8xf32>
    %55 = vector.shape_cast %54 : vector<8xf32> to vector<1x8xf32>
    %c0_22 = arith.constant 0 : index
    %c0_23 = arith.constant 0 : index
    %56 = memref.load %arg8[%c0_22, %c0_23] : memref<1x1xf32, #tpu.memory_space<smem>>
    %57 = vector.broadcast %56 : f32 to vector<1x8xf32>
    %58 = arith.addf %55, %57 : vector<1x8xf32>
    %c0_24 = arith.constant 0 : index
    %c0_25 = arith.constant 0 : index
    %c0_26 = arith.constant 0 : index
    %59 = vector.load %arg9[%c0_24, %c0_25, %c0_26] : memref<1x1x8xf32, #tpu.memory_space<vmem>>, vector<1x1x8xf32>
    %60 = vector.shape_cast %59 : vector<1x1x8xf32> to vector<1x8xf32>
    %61 = vector.shape_cast %58 : vector<1x8xf32> to vector<1x1x8xf32>
    tpu.vector_store %arg9[%c0_24, %c0_25, %c0_26], %61 {strides = array<i32>} : memref<1x1x8xf32, #tpu.memory_space<vmem>>, vector<1x1x8xf32>,
    return
  }
  func.func @transform_0(%arg0: i32, %arg1: i32) -> (i32, i32, i32) {
    %c0_i32 = arith.constant 0 : i32
    %c0_i32_0 = arith.constant 0 : i32
    return %arg1, %c0_i32, %arg0 : i32, i32, i32
  }
  func.func @transform_1(%arg0: i32, %arg1: i32) -> (i32, i32) {
    %c0_i32 = arith.constant 0 : i32
    %c0_i32_0 = arith.constant 0 : i32
    return %c0_i32, %arg0 : i32, i32
  }
  func.func @transform_2(%arg0: i32, %arg1: i32) -> (i32, i32) {
    %c0_i32 = arith.constant 0 : i32
    %c0_i32_0 = arith.constant 0 : i32
    %c0_i32_1 = arith.constant 0 : i32
    return %c0_i32, %c0_i32_0 : i32, i32
  }
  func.func @transform_3(%arg0: i32, %arg1: i32) -> (i32, i32) {
    %c0_i32 = arith.constant 0 : i32
    %c0_i32_0 = arith.constant 0 : i32
    %c0_i32_1 = arith.constant 0 : i32
    return %c0_i32, %c0_i32_0 : i32, i32
  }
  func.func @transform_4(%arg0: i32, %arg1: i32) -> (i32, i32) {
    %c0_i32 = arith.constant 0 : i32
    %c0_i32_0 = arith.constant 0 : i32
    %c0_i32_1 = arith.constant 0 : i32
    return %c0_i32, %c0_i32_0 : i32, i32
  }
  func.func @transform_5(%arg0: i32, %arg1: i32) -> (i32, i32) {
    %c0_i32 = arith.constant 0 : i32
    %c0_i32_0 = arith.constant 0 : i32
    %c0_i32_1 = arith.constant 0 : i32
    return %c0_i32, %c0_i32_0 : i32, i32
  }
  func.func @transform_6(%arg0: i32, %arg1: i32) -> (i32, i32) {
    %c0_i32 = arith.constant 0 : i32
    %c0_i32_0 = arith.constant 0 : i32
    %c0_i32_1 = arith.constant 0 : i32
    return %c0_i32, %c0_i32_0 : i32, i32
  }
  func.func @transform_7(%arg0: i32, %arg1: i32) -> (i32, i32, i32) {
    %c0_i32 = arith.constant 0 : i32
    %c0_i32_0 = arith.constant 0 : i32
    return %arg1, %c0_i32, %arg0 : i32, i32, i32
  }
  func.func @transform_8(%arg0: i32, %arg1: i32) -> (i32, i32) {
    %c0_i32 = arith.constant 0 : i32
    %c0_i32_0 = arith.constant 0 : i32
    return %c0_i32, %arg0 : i32, i32
  }
}

</mosaic_0001>

<bundles_post_ra>
// kernel: tpu_custom_call.1
= control target key start
LH: loop header
LB: loop body
LE: loop exit
PB: predicated region body
PF: predicated region fallthrough
CT: control target
= control target key end

     0   :  { %vm38_vm0 = vcmask 64512   ;;  %v804_v3 = vmov 0   ;;  %vm98_vm1 = vcmask 195584   ;;  %s1287_s0 = inlined_call_operand.vmem [shape: f32[1,24,8], index: 0, kind: input, shape index: {}]   ;;  %s1288_s1 = inlined_call_operand.vmem [shape: f32[32,8], index: 1, kind: input, shape index: {}]   ;;  %s1289_s2 = inlined_call_operand.vmem [shape: f32[32,24], index: 2, kind: input, shape index: {}]   ;;  %s1290_s3 = inlined_call_operand.vmem [shape: f32[96,32], index: 3, kind: input, shape index: {}]   ;;  %s1291_s4 = inlined_call_operand.vmem [shape: f32[96,32], index: 4, kind: input, shape index: {}]   ;;  %s1292_s5 = inlined_call_operand.vmem [shape: f32[192,1], index: 5, kind: input, shape index: {}]   ;;  %s1293_s6 = inlined_call_operand.<no memory space> [shape: f32[1,1], index: 6, kind: input, shape index: {}]   ;;  %s1294_s7 = inlined_call_operand.hbm [shape: f32[1,1,8], index: 7, kind: output, shape index: {0}]   ;;  %s1295_s8 = inlined_call_operand.vmem [shape: f32[32,8], index: 8, kind: output, shape index: {1}]  }
   0x1   :  { %v45_v0 = vld [vmem:[%s1287_s0 + $0x10] sm:$0xff]  ;;  %v53_v1 = vld [vmem:[%s1292_s5 + $0x18] sm:$0xff]  ;;  %v51_v2 = vld [vmem:[%s1292_s5 + $0x8] sm:$0xff]  ;;  %736 = vset.pattern.permute.xlu1 %v804_v3  ;;  %735 = vset.pattern.permute.xlu0 %v804_v3 }
   0x2   :  { %v44_v4 = vld [vmem:[%s1287_s0 + $0x8] sm:$0xff]  ;;  %722 = vmatpush.msra.mxu3 %v45_v0  ;;  %95 = vperm.xlu0 %735, %v53_v1   ;;  %v37_v5 = vld [vmem:[%s1288_s1 + $0x18] sm:$0xff]  ;;  %v43_v6 = vld [vmem:[%s1287_s0] sm:$0xff] }
   0x3   :  { %85 = vperm.xlu1 %736, %v51_v2   ;;  %42 = vst.msk [vmem:[%s1295_s8 + $0x18] sm:$0xff] %vm38_vm0, %v37_v5  ;;  %v36_v7 = vld [vmem:[%s1288_s1 + $0x10] sm:$0xff]  ;;  %v35_v8 = vld [vmem:[%s1288_s1 + $0x8] sm:$0xff]  ;;  %124 = vmatpush.msra.mxu0 %v45_v0  ;;  %v34_v10 = vld [vmem:[%s1288_s1] sm:$0xff] }
   0x4   :  { %723 = vmatpush.msra.mxu3 %v44_v4  ;;  %v75_v9 = vld [vmem:[%s1289_s2 + $0x8] sm:$0xff]  ;;  %41 = vst.msk [vmem:[%s1295_s8 + $0x10] sm:$0xff] %vm38_vm0, %v36_v7  ;;  %737 = vset.pattern.permute.xlu2 %v804_v3  ;;  %v74_v11 = vld [vmem:[%s1289_s2] sm:$0xff]  ;;  %v52_v12 = vld [vmem:[%s1292_s5 + $0x10] sm:$0xff] }
   0x5   :  { %40 = vst.msk [vmem:[%s1295_s8 + $0x8] sm:$0xff] %vm38_vm0, %v35_v8  ;;  %125 = vmatpush.msra.mxu0 %v44_v4  ;;  %v50_v13 = vld [vmem:[%s1292_s5] sm:$0xff] }
   0x6   :  { %724 = vmatpush.msra.mxu3 %v43_v6  ;;  %39 = vst.msk [vmem:[%s1295_s8] sm:$0xff] %vm38_vm0, %v34_v10 }
   0x7   :  { %687 = vmatmul.msk.f32.vlgmr.msra.gmra.mxu3 %vm98_vm1, %v75_v9  ;;  %126 = vmatpush.msra.mxu0 %v43_v6 }
   0x8   :  { %686 = vmatmul.msk.f32.vlgmr.msra.gmra.mxu0 %vm98_vm1, %v74_v11 }
   0x9   :  { %15 = vsyncpa [#allocation4], 0  ;;  %v76_v17 = vld [vmem:[%s1289_s2 + $0x10] sm:$0xff]  ;;  %vm216_vm2 = vcmask 261120   ;;  %v311_v19 = vld [vmem:[%s1291_s4 + $0x28] sm:$0xff]  ;;  %s673_s24 = sshll.u32 %s1294_s7, 4  ;;  %s674_s24 = int_to_ptr.hbm [resolvable:$true] %s673_s24 }
   0xa   :  { %v911_v14 = vld [vmem:[%s1295_s8 + $0x18] sm:$0xff]  ;;  %90 = vperm.xlu0 %735, %v52_v12   ;;  %v56_v20 = vld [vmem:[%s1292_s5 + $0x30] sm:$0xff]  ;;  %v59_v24 = vld [vmem:[%s1292_s5 + $0x48] sm:$0xff] }
   0xb   :  { %729 = vmatpush.msra.mxu2 %v911_v14  ;;  %80 = vperm.xlu1 %736, %v50_v13   ;;  %v917_v15 = vld [vmem:[%s1295_s8 + $0x10] sm:$0xff]  ;;  %v57_v21 = vld [vmem:[%s1292_s5 + $0x38] sm:$0xff]  ;;  %v66_v27 = vld [vmem:[%s1292_s5 + $0x80] sm:$0xff] }
   0xc   :  { %v922_v16 = vld [vmem:[%s1295_s8 + $0x8] sm:$0xff]  ;;  %366 = vmatpush.msrb.mxu0 %v911_v14  ;;  %v77_v22 = vld [vmem:[%s1289_s2 + $0x18] sm:$0xff]  ;;  %v312_v23 = vld [vmem:[%s1291_s4 + $0x30] sm:$0xff] }
   0xd   :  { %730 = vmatpush.msra.mxu2 %v917_v15  ;;  %v932_v18 = vld [vmem:[%s1295_s8] sm:$0xff]  ;;  %v60_v25 = vld [vmem:[%s1292_s5 + $0x50] sm:$0xff]  ;;  %v313_v26 = vld [vmem:[%s1291_s4 + $0x38] sm:$0xff] }
   0xe   :  { %367 = vmatpush.msrb.mxu0 %v917_v15  ;;  %v67_v28 = vld [vmem:[%s1292_s5 + $0x88] sm:$0xff]  ;;  %v314_v29 = vld [vmem:[%s1291_s4 + $0x40] sm:$0xff]  ;;  %v68_v31 = vld [vmem:[%s1292_s5 + $0x90] sm:$0xff] }
   0xf   :  { %731 = vmatpush.msra.mxu2 %v922_v16  ;;  %688 = vmatmul.msk.f32.gmra.mxu3 %vm98_vm1, %v76_v17  ;;  %v63_v30 = vld [vmem:[%s1292_s5 + $0x68] sm:$0xff]  ;;  %v69_v33 = vld [vmem:[%s1292_s5 + $0x98] sm:$0xff]  ;;  %v316_v35 = vld [vmem:[%s1291_s4 + $0x50] sm:$0xff] }
  0x10   :  { %368 = vmatpush.msrb.mxu0 %v922_v16  ;;  %v315_v32 = vld [vmem:[%s1291_s4 + $0x48] sm:$0xff]  ;;  %v65_v34 = vld [vmem:[%s1292_s5 + $0x78] sm:$0xff]  ;;  %v72_v37 = vld [vmem:[%s1292_s5 + $0xb0] sm:$0xff] }
  0x11   :  { %732 = vmatpush.msra.mxu2 %v932_v18  ;;  %v71_v36 = vld [vmem:[%s1292_s5 + $0xa8] sm:$0xff]  ;;  %v317_v38 = vld [vmem:[%s1291_s4 + $0x58] sm:$0xff]  ;;  %v306_v39 = vld [vmem:[%s1291_s4] sm:$0xff] }
  0x12   :  { %707 = vmatmul.msk.f32.vlgmr.msra.gmra.mxu2 %vm216_vm2, %v311_v19  ;;  %168 = vperm.xlu0 %735, %v56_v20   ;;  %v54_v40 = vld [vmem:[%s1292_s5 + $0x20] sm:$0xff]  ;;  %v307_v42 = vld [vmem:[%s1291_s4 + $0x8] sm:$0xff]  ;;  %v308_v47 = vld [vmem:[%s1291_s4 + $0x10] sm:$0xff] }
  0x13   :  { %173 = vperm.xlu1 %736, %v57_v21   ;;  %369 = vmatpush.msrb.mxu0 %v932_v18  ;;  %v55_v43 = vld [vmem:[%s1292_s5 + $0x28] sm:$0xff]  ;;  %v58_v48 = vld [vmem:[%s1292_s5 + $0x40] sm:$0xff]  ;;  %v309_v57 = vld [vmem:[%s1291_s4 + $0x18] sm:$0xff] }
  0x14   :  { %702 = vmatmul.msk.f32.vlgmr.msrb.gmra.mxu0 %vm216_vm2, %v306_v39  ;;  %158 = vperm.xlu2 %737, %v54_v40   ;;  %v61_v60 = vld [vmem:[%s1292_s5 + $0x58] sm:$0xff]  ;;  %v144_v63 = vld [vmem:[%s1290_s3] sm:$0xff]  ;;  %v145_v3 = vld [vmem:[%s1290_s3 + $0x8] sm:$0xff] }
  0x15   :  { %v151_v0 = vld [vmem:[%s1290_s3 + $0x38] sm:$0xff]  ;;  %v310_v1 = vld [vmem:[%s1291_s4 + $0x20] sm:$0xff]  ;;  %v64_v5 = vld [vmem:[%s1292_s5 + $0x70] sm:$0xff] }
  0x16   :  { %v62_v2 = vld [vmem:[%s1292_s5 + $0x60] sm:$0xff]  ;;  %v146_v6 = vld [vmem:[%s1290_s3 + $0x10] sm:$0xff]  ;;  %v153_v7 = vld [vmem:[%s1290_s3 + $0x48] sm:$0xff] }
  0x17   :  { %689 = vmatmul.msk.f32.gmra.mxu3 %vm98_vm1, %v77_v22  ;;  %v152_v4 = vld [vmem:[%s1290_s3 + $0x40] sm:$0xff]  ;;  %v147_v9 = vld [vmem:[%s1290_s3 + $0x18] sm:$0xff]  ;;  %v154_v10 = vld [vmem:[%s1290_s3 + $0x50] sm:$0xff] }
  0x18   :  { %v70_v8 = vld [vmem:[%s1292_s5 + $0xa0] sm:$0xff]  ;;  %v73_v11 = vld [vmem:[%s1292_s5 + $0xb8] sm:$0xff]  ;;  %v149_v17 = vld [vmem:[%s1290_s3 + $0x28] sm:$0xff] }
  0x19   :  { %v148_v12 = vld [vmem:[%s1290_s3 + $0x20] sm:$0xff]  ;;  %v155_v13 = vld [vmem:[%s1290_s3 + $0x58] sm:$0xff]  ;;  %v150_v19 = vld [vmem:[%s1290_s3 + $0x30] sm:$0xff] }
  0x1a   :  { %708 = vmatmul.msk.f32.gmra.mxu2 %vm216_vm2, %v312_v23  ;;  %183 = vperm.xlu0 %735, %v59_v24  }
  0x1b   :  { %188 = vperm.xlu1 %736, %v60_v25  }
  0x1c   :  { %703 = vmatmul.msk.f32.gmra.mxu0 %vm216_vm2, %v307_v42  ;;  %163 = vperm.xlu2 %737, %v55_v43  }
  0x22   :  { %709 = vmatmul.msk.f32.gmra.mxu2 %vm216_vm2, %v313_v26  ;;  %569 = vperm.xlu0 %735, %v66_v27  }
  0x23   :  { %574 = vperm.xlu1 %736, %v67_v28  }
  0x24   :  { %704 = vmatmul.msk.f32.gmra.mxu0 %vm216_vm2, %v308_v47  ;;  %178 = vperm.xlu2 %737, %v58_v48  }
  0x2a   :  { %710 = vmatmul.msk.f32.gmra.mxu2 %vm216_vm2, %v314_v29  ;;  %203 = vperm.xlu0 %735, %v63_v30  }
  0x2b   :  { %579 = vperm.xlu1 %736, %v68_v31  }
  0x2c   :  { %705 = vmatmul.msk.f32.gmra.mxu0 %vm216_vm2, %v309_v57  ;;  %193 = vperm.xlu2 %737, %v61_v60  }
  0x32   :  { %711 = vmatmul.msk.f32.gmra.mxu2 %vm216_vm2, %v315_v32  ;;  %584 = vperm.xlu0 %735, %v69_v33  }
  0x33   :  { %213 = vperm.xlu1 %736, %v65_v34  }
  0x34   :  { %706 = vmatmul.msk.f32.gmra.mxu0 %vm216_vm2, %v310_v1  ;;  %198 = vperm.xlu2 %737, %v62_v2  }
  0x3a   :  { %712 = vmatmul.msk.f32.gmra.mxu2 %vm216_vm2, %v316_v35  ;;  %631 = vperm.xlu0 %735, %v71_v36  }
  0x3b   :  { %636 = vperm.xlu1 %736, %v72_v37  }
  0x3c   :  { %208 = vperm.xlu2 %737, %v64_v5  }
  0x42   :  { %713 = vmatmul.msk.f32.gmra.mxu2 %vm216_vm2, %v317_v38 }
  0x44   :  { %626 = vperm.xlu2 %737, %v70_v8  }
  0x4c   :  { %641 = vperm.xlu2 %737, %v73_v11  }
  0x6e   :  { %v159_v21 = vpop.permute.xlu2 %158 }
  0x74   :  { %v96_v44 = vpop.permute.xlu0 %95 }
  0x75   :  { %v86_v46 = vpop.permute.xlu1 %85 }
  0x76   :  { %v164_v23 = vpop.permute.xlu2 %163 }
  0x7c   :  { %v91_v49 = vpop.permute.xlu0 %90 }
  0x7d   :  { %v81_v56 = vpop.permute.xlu1 %80 }
  0x7e   :  { %v179_v27 = vpop.permute.xlu2 %178 }
  0x84   :  { %v169_v29 = vpop.permute.xlu0 %168 }
  0x85   :  { %v128_v53 = vpop.f32.mrf.mxu0  ;;  %v174_v39 = vpop.permute.xlu1 %173 }
  0x86   :  { %v129_v59 = vadd.f32 %v128_v53, %v81_v56  ;;  %v194_v36 = vpop.permute.xlu2 %193 }
  0x88   :  { %v140_v62 = vmax.f32 %v129_v59, 0.0 }
  0x8a   :  { %v131_v41 = vpop.f32.mrf.mxu3 }
  0x8b   :  { %v132_v54 = vadd.f32 %v131_v41, %v86_v46 }
  0x8c   :  { %v184_v41 = vpop.permute.xlu0 %183 }
  0x8d   :  { %v141_v61 = vmax.f32 %v132_v54, 0.0  ;;  %v1108_v53 = vpop.permute.xlu1 %188 }
  0x91   :  { %v371_v24 = vpop.f32.mrf.mxu0 }
  0x92   :  { %v134_v45 = vpop.f32.mrf.mxu3 }
  0x93   :  { %v135_v51 = vadd.f32 %v134_v45, %v91_v49 }
  0x95   :  { %v142_v58 = vmax.f32 %v135_v51, 0.0  ;;  %v1100_v20 = vpop.f32.mrf.mxu2 }
  0x99   :  { %v374_v31 = vpop.f32.mrf.mxu0 }
  0x9a   :  { %v137_v50 = vpop.f32.mrf.mxu3 }
  0x9b   :  { %v138_v52 = vadd.f32 %v137_v50, %v96_v44 }
  0x9d   :  { %v143_v55 = vmax.f32 %v138_v52, 0.0  ;;  %v1102_v22 = vpop.f32.mrf.mxu2 }
  0x9f   :  { %265 = vmatpush.msra.mxu1 %v143_v55  ;;  %725 = vmatpush.msrb.mxu3 %v143_v55  ;;  %v570_v55 = vpop.permute.xlu0 %569 }
  0xa1   :  { %266 = vmatpush.msra.mxu1 %v142_v58  ;;  %726 = vmatpush.msrb.mxu3 %v142_v58  ;;  %v377_v43 = vpop.f32.mrf.mxu0 }
  0xa3   :  { %267 = vmatpush.msra.mxu1 %v141_v61  ;;  %727 = vmatpush.msrb.mxu3 %v141_v61 }
  0xa5   :  { %268 = vmatpush.msra.mxu1 %v140_v62  ;;  %728 = vmatpush.msrb.mxu3 %v140_v62  ;;  %v392_v25 = vpop.f32.mrf.mxu2 }
  0xa6   :  { %690 = vmatmul.msk.f32.vlgmr.msra.gmra.mxu1 %vm216_vm2, %v144_v63  ;;  %697 = vmatmul.msk.f32.vlgmr.msrb.gmra.mxu3 %vm216_vm2, %v151_v0 }
  0xa9   :  { %v380_v57 = vpop.f32.mrf.mxu0 }
  0xad   :  { %v1104_v35 = vpop.f32.mrf.mxu2 }
  0xae   :  { %691 = vmatmul.msk.f32.gmra.mxu1 %vm216_vm2, %v145_v3  ;;  %698 = vmatmul.msk.f32.gmra.mxu3 %vm216_vm2, %v152_v4  ;;  %v575_v4 = vpop.permute.xlu1 %574 }
  0xb5   :  { %v398_v52 = vpop.f32.mrf.mxu2 }
  0xb6   :  { %692 = vmatmul.msk.f32.gmra.mxu1 %vm216_vm2, %v146_v6  ;;  %699 = vmatmul.msk.f32.gmra.mxu3 %vm216_vm2, %v153_v7  ;;  %v204_v7 = vpop.permute.xlu0 %203 }
  0xbd   :  { %v401_v1 = vpop.f32.mrf.mxu2 }
  0xbe   :  { %693 = vmatmul.msk.f32.gmra.mxu1 %vm216_vm2, %v147_v9  ;;  %700 = vmatmul.msk.f32.gmra.mxu3 %vm216_vm2, %v154_v10  ;;  %v383_v9 = vpop.f32.mrf.mxu0 }
  0xc6   :  { %694 = vmatmul.msk.f32.gmra.mxu1 %vm216_vm2, %v148_v12  ;;  %701 = vmatmul.msk.f32.gmra.mxu3 %vm216_vm2, %v155_v13 }
  0xce   :  { %695 = vmatmul.msk.f32.gmra.mxu1 %vm216_vm2, %v149_v17 }
  0xd6   :  { %696 = vmatmul.msk.f32.gmra.mxu1 %vm216_vm2, %v150_v19 }
 0x123   :  { %v270_v26 = vpop.f32.mrf.mxu1 }
 0x124   :  { %v271_v28 = vadd.f32 %v270_v26, %v159_v21 }
 0x126   :  { %v407_v30 = vadd.f32 %v371_v24, %v271_v28  ;;  %v404_v28 = vpop.f32.mrf.mxu2 }
 0x128   :  { %v714_v32 = vmul.f32 -1.442695, %v407_v30 }
 0x129   :  { %v291_v37 = vpop.f32.mrf.mxu3 }
 0x12a   :  { %738 = vpow2.f32 %v714_v32  ;;  %v292_v40 = vadd.f32 %v291_v37, %v194_v36  ;;  %v587_v36 = vadd.f32 %v570_v55, %v1104_v35 }
 0x12b   :  { %v273_v33 = vpop.f32.mrf.mxu1 }
 0x12c   :  { %v274_v34 = vadd.f32 %v273_v33, %v164_v23  ;;  %v490_v45 = vadd.f32 %v392_v25, %v292_v40  ;;  %v580_v33 = vpop.permute.xlu1 %579 }
 0x12d   :  { %v1142_v40 = vadd.f32 %v580_v33, %v401_v1 }
 0x12e   :  { %v408_v38 = vadd.f32 %v374_v31, %v274_v34  ;;  %v721_v50 = vmul.f32 -1.442695, %v490_v45  ;;  %v585_v34 = vpop.permute.xlu0 %584 }
 0x130   :  { %v715_v42 = vmul.f32 -1.442695, %v408_v38  ;;  %v739_v44 = vpop.eup %738 }
 0x131   :  { %v1106_v48 = vadd.f32 1.0, %v739_v44  ;;  %v294_v60 = vpop.f32.mrf.mxu3 }
 0x132   :  { %740 = vpow2.f32 %v715_v42  ;;  %v199_v42 = vpop.permute.xlu2 %198 }
 0x133   :  { %v276_v46 = vpop.f32.mrf.mxu1  ;;  %742 = vrcp.f32 %v1106_v48  ;;  %v438_v31 = vand.u32 2147483648, %v1106_v48  ;;  %v295_v45 = vadd.f32 %v294_v60, %v199_v42  ;;  %vm432_vm4 = vweird.f32 %v1106_v48 }
 0x134   :  { %v277_v47 = vadd.f32 %v276_v46, %v169_v29  ;;  %744 = vpow2.f32 %v721_v50  ;;  %v436_v29 = vand.u32 2147483647, %v1106_v48 }
 0x136   :  { %v409_v49 = vadd.f32 %v377_v43, %v277_v47  ;;  %vm1150_vm5 = vcmp.eq.f32.partialorder %v436_v29, 8.507059e+37 }
 0x138   :  { %v741_v51 = vpop.eup %740  ;;  %v716_v54 = vmul.f32 -1.442695, %v409_v49 }
 0x139   :  { %v1111_v56 = vadd.f32 1.0, %v741_v51  ;;  %v1114_v62 = vpop.eup %742  ;;  %v297_v17 = vpop.f32.mrf.mxu3  ;;  %v439_v51 = vor.u32 1.1754944e-38, %v438_v31 }
 0x13a   :  { %746 = vpow2.f32 %v716_v54  ;;  %v745_v0 = vpop.eup %744  ;;  %v428_v2 = vmul.f32 %v1114_v62, %v1106_v48  ;;  %vm433_vm3 = vweird.f32 %v1114_v62 }
 0x13b   :  { %v279_v58 = vpop.f32.mrf.mxu1  ;;  %748 = vrcp.f32 %v1111_v56  ;;  %v1120_v8 = vadd.f32 1.0, %v745_v0  ;;  %vm1159_vm6 = vmor %vm432_vm4, %vm433_vm3  ;;  %v451_v48 = vand.u32 2147483647, %v1111_v56  ;;  %v453_v55 = vand.u32 2147483648, %v1111_v56 }
 0x13c   :  { %v280_v59 = vadd.f32 %v279_v58, %v174_v39  ;;  %v429_v11 = vsub.f32 1.0, %v428_v2  ;;  %v1140_v39 = vadd.f32 %v575_v4, %v398_v52  ;;  %vm447_vm9 = vweird.f32 %v1111_v56 }
 0x13d   :  { %v563_v49 = vand.u32 2147483648, %v1120_v8  ;;  %vm557_vm7 = vweird.f32 %v1120_v8  ;;  %v561_v2 = vand.u32 2147483647, %v1120_v8  ;;  %vm1190_vm11 = vcmp.eq.f32.partialorder %v451_v48, 8.507059e+37 }
 0x13e   :  { %v410_v61 = vadd.f32 %v380_v57, %v280_v59  ;;  %v430_v24 = vmul.f32 %v1114_v62, %v429_v11 }
 0x13f   :  { %vm1203_vm13 = vcmp.eq.f32.partialorder %v561_v2, 8.507059e+37 }
 0x140   :  { %v717_v63 = vmul.f32 -1.442695, %v410_v61  ;;  %v747_v3 = vpop.eup %746  ;;  %v431_v37 = vadd.f32 %v1114_v62, %v430_v24 }
 0x141   :  { %v1118_v6 = vpop.eup %748  ;;  %v1122_v12 = vadd.f32 1.0, %v747_v3  ;;  %v1164_v52 = vpop.f32.mrf.mxu3 }
 0x142   :  { %750 = vpow2.f32 %v717_v63  ;;  %v443_v13 = vmul.f32 %v1118_v6, %v1111_v56  ;;  %v435_v54 = vsel %vm1159_vm6, %v1114_v62, %v431_v37  ;;  %vm448_vm8 = vweird.f32 %v1118_v6 }
 0x143   :  { %v282_v5 = vpop.f32.mrf.mxu1  ;;  %752 = vrcp.f32 %v1120_v8  ;;  %v1177_v63 = vadd.f32 %v297_v17, %v204_v7  ;;  %v440_v1 = vsel %vm1150_vm5, %v439_v51, %v435_v54  ;;  %vm1186_vm10 = vmor %vm447_vm9, %vm448_vm8  ;;  %v454_v56 = vor.u32 1.1754944e-38, %v453_v55 }
 0x144   :  { %v283_v10 = vadd.f32 %v282_v5, %v179_v27  ;;  %754 = vrcp.f32 %v1122_v12  ;;  %v444_v25 = vsub.f32 1.0, %v443_v13  ;;  %vm462_vm6 = vweird.f32 %v1122_v12 }
 0x146   :  { %v487_v19 = vadd.f32 %v383_v9, %v283_v10  ;;  %v445_v43 = vmul.f32 %v1118_v6, %v444_v25  ;;  %v1194_v9 = vor.u32 1.1754944e-38, %v563_v49 }
 0x148   :  { %v718_v21 = vmul.f32 -1.442695, %v487_v19  ;;  %v751_v23 = vpop.eup %750  ;;  %v446_v60 = vadd.f32 %v1118_v6, %v445_v43  ;;  %v591_v19 = vmul.f32 %v587_v36, %v440_v1 }
 0x149   :  { %v1129_v26 = vadd.f32 1.0, %v751_v23  ;;  %v1134_v32 = vpop.eup %752  ;;  %v303_v33 = vpop.f32.mrf.mxu3 }
 0x14a   :  { %756 = vpow2.f32 %v718_v21  ;;  %v1147_v44 = vpop.eup %754  ;;  %v553_v47 = vmul.f32 %v1134_v32, %v1120_v8  ;;  %v450_v10 = vsel %vm1186_vm10, %v1118_v6, %v446_v60  ;;  %vm558_vm15 = vweird.f32 %v1134_v32 }
 0x14b   :  { %v285_v27 = vpop.f32.mrf.mxu1  ;;  %758 = vrcp.f32 %v1129_v26  ;;  %v458_v59 = vmul.f32 %v1147_v44, %v1122_v12  ;;  %v483_v13 = vand.u32 2147483648, %v1129_v26  ;;  %v481_v23 = vand.u32 2147483647, %v1129_v26  ;;  %vm1224_vm4 = vmor %vm557_vm7, %vm558_vm15 }
 0x14c   :  { %v286_v30 = vadd.f32 %v285_v27, %v184_v41  ;;  %v1144_v41 = vadd.f32 %v585_v34, %v404_v28  ;;  %v554_v0 = vsub.f32 1.0, %v553_v47  ;;  %v455_v29 = vsel %vm1190_vm11, %v454_v56, %v450_v10  ;;  %v209_v10 = vpop.permute.xlu2 %208 }
 0x14d   :  { %v459_v11 = vsub.f32 1.0, %v458_v59  ;;  %vm477_vm14 = vweird.f32 %v1129_v26  ;;  %v484_v34 = vor.u32 1.1754944e-38, %v483_v13  ;;  %v595_v36 = vadd.f32 %v591_v19, %v295_v45 }
 0x14e   :  { %v488_v38 = vadd.f32 %v1100_v20, %v286_v30  ;;  %v555_v24 = vmul.f32 %v1134_v32, %v554_v0  ;;  %vm482_vm2 = vcmp.eq.f32.partialorder %v481_v23, 8.507059e+37  ;;  %vm463_vm3 = vweird.f32 %v1147_v44 }
 0x14f   :  { %v460_v30 = vmul.f32 %v1147_v44, %v459_v11  ;;  %v592_v35 = vmul.f32 %v1140_v39, %v455_v29  ;;  %v468_v39 = vand.u32 2147483648, %v1122_v12  ;;  %vm1235_vm7 = vmor %vm462_vm6, %vm463_vm3  ;;  %v301_v29 = vadd.f32 %v1164_v52, %v209_v10 }
 0x150   :  { %v719_v46 = vmul.f32 -1.442695, %v488_v38  ;;  %v757_v20 = vpop.eup %756  ;;  %v214_v38 = vpop.permute.xlu1 %213  ;;  %v556_v43 = vadd.f32 %v1134_v32, %v555_v24 }
 0x151   :  { %v1170_v57 = vadd.f32 1.0, %v757_v20  ;;  %v759_v58 = vpop.eup %758  ;;  %v304_v20 = vadd.f32 %v303_v33, %v214_v38  ;;  %v461_v49 = vadd.f32 %v1147_v44, %v460_v30  ;;  %v596_v60 = vadd.f32 %v592_v35, %v1177_v63 }
 0x152   :  { %760 = vpow2.f32 %v719_v46  ;;  %v473_v62 = vmul.f32 %v759_v58, %v1129_v26  ;;  %vm478_vm12 = vweird.f32 %v759_v58 }
 0x153   :  { %v288_v61 = vpop.f32.mrf.mxu1  ;;  %762 = vrcp.f32 %v1170_v57  ;;  %vm479_vm1 = vmor %vm477_vm14, %vm478_vm12  ;;  %v518_v46 = vand.u32 2147483648, %v1170_v57  ;;  %v516_v51 = vand.u32 2147483647, %v1170_v57  ;;  %vm512_vm8 = vweird.f32 %v1170_v57 }
 0x154   :  { %v289_v3 = vadd.f32 %v288_v61, %v1108_v53  ;;  %v474_v7 = vsub.f32 1.0, %v473_v62  ;;  %v465_v0 = vsel %vm1235_vm7, %v1147_v44, %v461_v49 }
 0x155   :  { %v519_v61 = vor.u32 1.1754944e-38, %v518_v46  ;;  %vm517_vm10 = vcmp.eq.f32.partialorder %v516_v51, 8.507059e+37 }
 0x156   :  { %v489_v53 = vadd.f32 %v1102_v22, %v289_v3  ;;  %v475_v21 = vmul.f32 %v759_v58, %v474_v7 }
 0x158   :  { %v761_v17 = vpop.eup %760  ;;  %v720_v6 = vmul.f32 -1.442695, %v489_v53  ;;  %v476_v22 = vadd.f32 %v759_v58, %v475_v21 }
 0x159   :  { %v1207_v27 = vadd.f32 1.0, %v761_v17  ;;  %v763_v28 = vpop.eup %762 }
 0x15a   :  { %v508_v31 = vmul.f32 %v763_v28, %v1170_v57  ;;  %v480_v37 = vsel %vm479_vm1, %v759_v58, %v476_v22  ;;  %vm513_vm5 = vweird.f32 %v763_v28  ;;  %v560_v58 = vsel %vm1224_vm4, %v1134_v32, %v556_v43 }
 0x15b   :  { %764 = vrcp.f32 %v1207_v27  ;;  %v485_v26 = vsel %vm482_vm2, %v484_v34, %v480_v37  ;;  %vm514_vm9 = vmor %vm512_vm8, %vm513_vm5  ;;  %v469_v57 = vor.u32 1.1754944e-38, %v468_v39  ;;  %v565_v32 = vsel %vm1203_vm13, %v1194_v9, %v560_v58 }
 0x15c   :  { %766 = vpow2.f32 %v720_v6  ;;  %v509_v42 = vsub.f32 1.0, %v508_v31  ;;  %v594_v47 = vmul.f32 %v1144_v41, %v485_v26  ;;  %v466_v41 = vand.u32 2147483647, %v1122_v12 }
 0x15d   :  { %768 = vtanh.f32 %v595_v36  ;;  %v533_v4 = vand.u32 2147483648, %v1207_v27  ;;  %v531_v44 = vand.u32 2147483647, %v1207_v27  ;;  %v606_v53 = vsub.f32 1.0, %v565_v32 }
 0x15e   :  { %v510_v50 = vmul.f32 %v763_v28, %v509_v42  ;;  %v598_v48 = vadd.f32 %v594_v47, %v304_v20  ;;  %vm467_vm11 = vcmp.eq.f32.partialorder %v466_v41, 8.507059e+37  ;;  %v614_v9 = vmul.f32 %v565_v32, %v911_v14  ;;  %v627_v42 = vpop.permute.xlu2 %626 }
 0x15f   :  { %v470_v56 = vsel %vm467_vm11, %v469_v57, %v465_v0  ;;  %vm527_vm13 = vweird.f32 %v1207_v27  ;;  %v534_v25 = vor.u32 1.1754944e-38, %v533_v4  ;;  %vm532_vm15 = vcmp.eq.f32.partialorder %v531_v44, 8.507059e+37 }
 0x160   :  { %v511_v55 = vadd.f32 %v763_v28, %v510_v50  ;;  %770 = vtanh.f32 %v598_v48  ;;  %v593_v21 = vmul.f32 %v1142_v40, %v470_v56  ;;  %v662_v32 = vstv %s1293_s6 }
 0x161   :  { %v765_v54 = vpop.eup %764  ;;  %vm664_vm5 = vcmask 57344  }
 0x162   :  { %v767_v59 = vpop.eup %766  ;;  %v523_v62 = vmul.f32 %v765_v54, %v1207_v27  ;;  %v515_v12 = vsel %vm514_vm9, %v763_v28, %v511_v55  ;;  %vm528_vm12 = vweird.f32 %v765_v54  ;;  %v597_v40 = vadd.f32 %v593_v21, %v301_v29 }
 0x163   :  { %v505_v1 = vadd.f32 1.0, %v767_v59  ;;  %v520_v2 = vsel %vm517_vm10, %v519_v61, %v515_v12  ;;  %v769_v5 = vpop.eup %768  ;;  %vm529_vm14 = vmor %vm527_vm13, %vm528_vm12 }
 0x164   :  { %v524_v3 = vsub.f32 1.0, %v523_v62  ;;  %v603_v63 = vsub.f32 1.0, %v520_v2  ;;  %v611_v13 = vmul.f32 %v520_v2, %v932_v18 }
 0x165   :  { %772 = vrcp.f32 %v505_v1  ;;  %v548_v34 = vand.u32 2147483648, %v505_v1  ;;  %v546_v37 = vand.u32 2147483647, %v505_v1  ;;  %vm542_vm2 = vweird.f32 %v505_v1 }
 0x166   :  { %v525_v7 = vmul.f32 %v765_v54, %v524_v3  ;;  %774 = vtanh.f32 %v596_v60  ;;  %v607_v11 = vmul.f32 %v769_v5, %v603_v63  ;;  %v771_v17 = vpop.eup %770  ;;  %v642_v8 = vpop.permute.xlu2 %641 }
 0x167   :  { %v610_v24 = vmul.f32 %v771_v17, %v606_v53  ;;  %776 = vtanh.f32 %v597_v40  ;;  %v549_v43 = vor.u32 1.1754944e-38, %v548_v34  ;;  %vm547_vm4 = vcmp.eq.f32.partialorder %v546_v37, 8.507059e+37 }
 0x168   :  { %v526_v19 = vadd.f32 %v765_v54, %v525_v7  ;;  %v615_v23 = vadd.f32 %v611_v13, %v607_v11 }
 0x169   :  { %v618_v14 = vadd.f32 %v614_v9, %v610_v24 }
 0x16a   :  { %v530_v6 = vsel %vm529_vm14, %v765_v54, %v526_v19  ;;  %620 = vst.msk [vmem:[%s1295_s8] sm:$0xff] %vm38_vm0, %v615_v23  ;;  %v644_v51 = vmul.f32 %v627_v42, %v615_v23  ;;  %v637_v54 = vpop.permute.xlu1 %636 }
 0x16b   :  { %v773_v28 = vpop.eup %772  ;;  %v535_v18 = vsel %vm532_vm15, %v534_v25, %v530_v6  ;;  %623 = vst.msk [vmem:[%s1295_s8 + $0x18] sm:$0xff] %vm38_vm0, %v618_v14  ;;  %v647_v41 = vmul.f32 %v642_v8, %v618_v14 }
 0x16c   :  { %v604_v22 = vsub.f32 1.0, %v535_v18  ;;  %v538_v27 = vmul.f32 %v773_v28, %v505_v1  ;;  %v775_v30 = vpop.eup %774  ;;  %v612_v33 = vmul.f32 %v535_v18, %v922_v16  ;;  %vm543_vm1 = vweird.f32 %v773_v28  ;;  %v632_v16 = vpop.permute.xlu0 %631 }
 0x16d   :  { %vm544_vm3 = vmor %vm542_vm2, %vm543_vm1  ;;  %v777_v47 = vpop.eup %776  ;;  %v648_v58 = vsel %vm38_vm0, %v644_v51, 0.0  ;;  %v653_v61 = vsel %vm38_vm0, %v647_v41, 0.0 }
 0x16e   :  { %v608_v31 = vmul.f32 %v775_v30, %v604_v22  ;;  %v539_v52 = vsub.f32 1.0, %v538_v27 }
 0x170   :  { %v540_v36 = vmul.f32 %v773_v28, %v539_v52  ;;  %v616_v38 = vadd.f32 %v612_v33, %v608_v31 }
 0x172   :  { %v541_v26 = vadd.f32 %v773_v28, %v540_v36  ;;  %621 = vst.msk [vmem:[%s1295_s8 + $0x8] sm:$0xff] %vm38_vm0, %v616_v38  ;;  %v645_v45 = vmul.f32 %v632_v16, %v616_v38 }
 0x174   :  { %v545_v35 = vsel %vm544_vm3, %v773_v28, %v541_v26  ;;  %v649_v48 = vsel %vm38_vm0, %v645_v45, 0.0 }
 0x175   :  { %v550_v46 = vsel %vm547_vm4, %v549_v43, %v545_v35  ;;  %v650_v59 = vadd.f32 %v649_v48, %v648_v58 }
 0x176   :  { %v605_v20 = vsub.f32 1.0, %v550_v46  ;;  %v613_v49 = vmul.f32 %v550_v46, %v917_v15 }
 0x178   :  { %v609_v50 = vmul.f32 %v777_v47, %v605_v20 }
 0x17a   :  { %v617_v39 = vadd.f32 %v613_v49, %v609_v50 }
 0x17c   :  { %622 = vst.msk [vmem:[%s1295_s8 + $0x10] sm:$0xff] %vm38_vm0, %v617_v39  ;;  %v646_v55 = vmul.f32 %v637_v54, %v617_v39  ;;  %s805_s8 = smov [#allocation3]  }
 0x17d   :  { %s671_s21 = sshll.u32 %s805_s8, 4  ;;  %s672_s21 = int_to_ptr.vmem [resolvable:$true] %s671_s21 }
 0x17e   :  { %v651_v60 = vsel %vm38_vm0, %v646_v55, 0.0 }
 0x17f   :  { %v652_v15 = vadd.f32 %v651_v60, %v650_v59 }
 0x181   :  { %v654_v62 = vadd.f32 %v653_v61, %v652_v15 }
 0x183   :  { %v655_v0 = vrot.slane %v654_v62, 4 }
 0x185   :  { %v656_v12 = vadd.f32 %v655_v0, %v654_v62 }
 0x187   :  { %v657_v1 = vrot.slane %v656_v12, 2 }
 0x189   :  { %v658_v57 = vadd.f32 %v657_v1, %v656_v12 }
 0x18b   :  { %v659_v2 = vrot.slane %v658_v57, 1 }
 0x18d   :  { %v660_v3 = vadd.f32 %v659_v2, %v658_v57 }
 0x18f   :  { %v663_v63 = vadd.f32 %v662_v32, %v660_v3 }
 0x191   :  { %665 = vst.msk [vmem:[#allocation3] sm:$0x1] %vm664_vm5, %v663_v63 }
 0x192   :  { %676 = dma.vmem_to_hbm [thread:$0]  %s672_s21, 16, %s674_s24, [#allocation4]  }
 0x193   :  { %802 = dma.done.wait [#allocation4], 16  }
 0x194   :  { %803 = vsyncadd [#allocation4], 4294967280 }
 0x195   :  { %685 = vsyncpa [#allocation4], 1 }

</bundles_post_ra>
